<compile_context>
chip_gen: v6e
topology: v6e:2x2x1
jax: 0.10.0
libtpu: 0.0.40
codegen_flags: <defaults>
</compile_context>

<pallas_src>
import jax
import jax.numpy as jnp
from jax.experimental import pallas as pl
from jax.experimental.pallas import tpu as pltpu

HIDDEN = 200        # logical hidden size (PyTorch spec)
HIDDEN_PAD = 256    # padded hidden size: multiple of the 128-lane vreg width


def _round_up(n, m):
    return ((n + m - 1) // m) * m


def _choose_bm(batch, bm_max):
    """Adaptive batch tile (rows per grid step).

    * B <= 8            -> one tiny tile (no redundant padded rows/MXU work)
    * B <= 2 * bm_max   -> exactly two tiles, so a v7x chip's two TensorCores
                           both get work (dimension_semantics=('parallel',));
                           costs one extra ~0.35us step on single-TC v5e/v6e.
    * otherwise         -> bm_max rows/step to amortize per-step overhead.
    """
    b8 = _round_up(max(batch, 1), 8)
    if b8 <= 8:
        return b8
    if b8 <= 2 * bm_max:
        return _round_up((b8 + 1) // 2, 8)
    return bm_max


def _mlp_kernel(x_ref, w1_ref, b1_ref, w2_ref, b2_ref, w3_ref, b3_ref, o_ref):
    wdt = w1_ref.dtype
    # Layer 1: Linear + ReLU (bf16 MXU passes, f32 accumulation + epilogue)
    h1 = jnp.dot(x_ref[...].astype(wdt), w1_ref[...],
                 preferred_element_type=jnp.float32)
    h1 = jnp.maximum(h1 + b1_ref[...], 0.0)
    # Layer 2: Linear + ReLU (dominant 256x256 matmul, well shaped for MXU)
    h2 = jnp.dot(h1.astype(wdt), w2_ref[...],
                 preferred_element_type=jnp.float32)
    h2 = jnp.maximum(h2 + b2_ref[...], 0.0)
    # Layer 3: Linear (no activation), narrow-N output kept unpadded
    out = jnp.dot(h2.astype(wdt), w3_ref[...],
                  preferred_element_type=jnp.float32)
    o_ref[...] = (out + b3_ref[...]).astype(o_ref.dtype)


def mlp_forward(x, params, *, bm_max=1024, weight_dtype=jnp.bfloat16):
    """x: [B, input_dim] float32. params: dict of w1,b1,w2,b2,w3,b3.

    Default path uses bf16 weights/activation casts with f32 accumulation
    (fast on v5e/v6e/v7x MXUs).  Pass weight_dtype=jnp.float32 for an
    exact-f32 path.
    """
    B, input_dim = x.shape
    output_dim = params["w3"].shape[1]

    bm = _choose_bm(B, bm_max)
    b_pad = _round_up(B, bm)
    hpad = HIDDEN_PAD - HIDDEN

    # Zero-pad weights & biases to tile-aligned hidden size.  Exact: zero
    # columns + zero bias keep ReLU outputs at exactly 0 in padded lanes, and
    # zero rows contribute nothing downstream.
    w1 = jnp.pad(params["w1"], ((0, 0), (0, hpad))).astype(weight_dtype)
    b1 = jnp.pad(params["b1"], ((0, 0), (0, hpad))).astype(jnp.float32)
    w2 = jnp.pad(params["w2"], ((0, hpad), (0, hpad))).astype(weight_dtype)
    b2 = jnp.pad(params["b2"], ((0, 0), (0, hpad))).astype(jnp.float32)
    w3 = jnp.pad(params["w3"], ((0, hpad), (0, 0))).astype(weight_dtype)
    b3 = params["b3"].astype(jnp.float32)

    xp = jnp.pad(x, ((0, b_pad - B), (0, 0)))

    grid = (b_pad // bm,)
    in_specs = [
        pl.BlockSpec((bm, input_dim), lambda i: (i, 0)),            # x tile
        pl.BlockSpec((input_dim, HIDDEN_PAD), lambda i: (0, 0)),    # w1 (resident)
        pl.BlockSpec((1, HIDDEN_PAD), lambda i: (0, 0)),            # b1
        pl.BlockSpec((HIDDEN_PAD, HIDDEN_PAD), lambda i: (0, 0)),   # w2
        pl.BlockSpec((1, HIDDEN_PAD), lambda i: (0, 0)),            # b2
        pl.BlockSpec((HIDDEN_PAD, output_dim), lambda i: (0, 0)),   # w3
        pl.BlockSpec((1, output_dim), lambda i: (0, 0)),            # b3
    ]
    # Output block's last dim equals the full array dim (no 128-lane padding):
    # masked vst but 16x less output HBM traffic when output_dim is tiny.
    out_specs = pl.BlockSpec((bm, output_dim), lambda i: (i, 0))

    out_padded = pl.pallas_call(
        _mlp_kernel,
        out_shape=jax.ShapeDtypeStruct((b_pad, output_dim), jnp.float32),
        grid=grid,
        in_specs=in_specs,
        out_specs=out_specs,
        compiler_params=pltpu.CompilerParams(
            dimension_semantics=("parallel",)),
    )(xp, w1, b1, w2, b2, w3, b3)

    # Slice off batch padding outside the kernel.
    return out_padded[:B, :]


def init_params(key, input_dim, output_dim):
    """Deterministic synthetic init (PyTorch-Linear-style uniform bounds)."""
    ks = jax.random.split(key, 6)

    def lin(kw, kb, fan_in, fan_out):
        bound = 1.0 / jnp.sqrt(fan_in)
        w = jax.random.uniform(kw, (fan_in, fan_out), jnp.float32, -bound, bound)
        b = jax.random.uniform(kb, (1, fan_out), jnp.float32, -bound, bound)
        return w, b

    w1, b1 = lin(ks[0], ks[1], input_dim, HIDDEN)
    w2, b2 = lin(ks[2], ks[3], HIDDEN, HIDDEN)
    w3, b3 = lin(ks[4], ks[5], HIDDEN, output_dim)
    return {"w1": w1, "b1": b1, "w2": w2, "b2": b2, "w3": w3, "b3": b3}


def mlp_reference(x, p):
    h1 = jnp.maximum(x @ p["w1"] + p["b1"], 0.0)
    h2 = jnp.maximum(h1 @ p["w2"] + p["b2"], 0.0)
    return h2 @ p["w3"] + p["b3"]


if __name__ == "__main__":
    key = jax.random.PRNGKey(0)
    k_x, k_p, k_x2 = jax.random.split(key, 3)

    input_dim, output_dim = 32, 8
    params = init_params(k_p, input_dim, output_dim)

    # Small inference-sized batch (single tiny tile, no padded-row waste).
    x_small = jax.random.normal(k_x, (8, input_dim), jnp.float32)
    # Batch that exercises the 2-tile (padded, parallel-grid) path.
    x_multi = jax.random.normal(k_x2, (40, input_dim), jnp.float32)

    ref_small = mlp_reference(x_small, params)
    ref_multi = mlp_reference(x_multi, params)

    # Exact-f32 path: tight tolerance vs the f32 reference.
    out_f32 = jax.block_until_ready(
        mlp_forward(x_small, params, weight_dtype=jnp.float32))
    assert out_f32.shape == (8, output_dim)
    assert jnp.allclose(out_f32, ref_small, atol=1e-3, rtol=1e-3), \
        "f32 path mismatch vs reference"

    # Default fast path (bf16 weights/activations, f32 accumulation): looser
    # tolerance, since activations are quantized to bf16 before each matmul.
    out_bf16 = jax.block_until_ready(mlp_forward(x_small, params))
    assert out_bf16.shape == (8, output_dim)
    assert jnp.allclose(out_bf16, ref_small, atol=5e-2, rtol=5e-2), \
        "bf16 path mismatch vs reference"

    out_multi = jax.block_until_ready(mlp_forward(x_multi, params))
    assert out_multi.shape == (40, output_dim)
    assert jnp.allclose(out_multi, ref_multi, atol=5e-2, rtol=5e-2), \
        "multi-tile bf16 path mismatch vs reference"

    print("KERNEL_OK")
</pallas_src>

<mosaic_0001>
module attributes {stable_mosaic.version = 11 : i64} {
  func.func @_mlp_kernel(%arg0: i32, %arg1: memref<8x32xf32, #tpu.memory_space<vmem>>, %arg2: memref<32x256xf32, #tpu.memory_space<vmem>>, %arg3: memref<1x256xf32, #tpu.memory_space<vmem>>, %arg4: memref<256x256xf32, #tpu.memory_space<vmem>>, %arg5: memref<1x256xf32, #tpu.memory_space<vmem>>, %arg6: memref<256x8xf32, #tpu.memory_space<vmem>>, %arg7: memref<1x8xf32, #tpu.memory_space<vmem>>, %arg8: memref<8x8xf32, #tpu.memory_space<vmem>>) attributes {dimension_semantics = [#tpu.dimension_semantics<parallel>], iteration_bounds = array<i64: 1>, scalar_prefetch = 0 : i64, scratch_operands = 0 : i64, tpu.core_type = #tpu.core_type<tc>, window_params = [{transform_indices = @transform_0, window_bounds = array<i64: 8, 32>}, {pipeline_mode = #tpu.pipeline_mode<synchronous>, transform_indices = @transform_1, window_bounds = array<i64: 32, 256>}, {pipeline_mode = #tpu.pipeline_mode<synchronous>, transform_indices = @transform_2, window_bounds = array<i64: 1, 256>}, {pipeline_mode = #tpu.pipeline_mode<synchronous>, transform_indices = @transform_3, window_bounds = array<i64: 256, 256>}, {pipeline_mode = #tpu.pipeline_mode<synchronous>, transform_indices = @transform_4, window_bounds = array<i64: 1, 256>}, {pipeline_mode = #tpu.pipeline_mode<synchronous>, transform_indices = @transform_5, window_bounds = array<i64: 256, 8>}, {pipeline_mode = #tpu.pipeline_mode<synchronous>, transform_indices = @transform_6, window_bounds = array<i64: 1, 8>}, {transform_indices = @transform_7, window_bounds = array<i64: 8, 8>}]} {
    %c0 = arith.constant 0 : index
    %c0_0 = arith.constant 0 : index
    %0 = vector.load %arg1[%c0, %c0_0] : memref<8x32xf32, #tpu.memory_space<vmem>>, vector<8x32xf32>
    %c0_1 = arith.constant 0 : index
    %c0_2 = arith.constant 0 : index
    %1 = vector.load %arg2[%c0_1, %c0_2] : memref<32x256xf32, #tpu.memory_space<vmem>>, vector<32x256xf32>
    %cst = arith.constant dense<0.000000e+00> : vector<8x256xf32>
    %2 = tpu.matmul %0, %1, %cst {dimension_numbers = #tpu.dot_dimension_numbers<[1], [0], [0], [1], [0, 0, 1, 1], [], []>} : vector<8x32xf32>, vector<32x256xf32>, vector<8x256xf32> -> vector<8x256xf32>
    %c0_3 = arith.constant 0 : index
    %c0_4 = arith.constant 0 : index
    %3 = vector.load %arg3[%c0_3, %c0_4] : memref<1x256xf32, #tpu.memory_space<vmem>>, vector<1x256xf32>
    %4 = vector.broadcast %3 : vector<1x256xf32> to vector<8x256xf32>
    %5 = arith.addf %2, %4 : vector<8x256xf32>
    %cst_5 = arith.constant 0.000000e+00 : f32
    %6 = vector.broadcast %cst_5 : f32 to vector<8x256xf32>
    %7 = arith.maximumf %5, %6 : vector<8x256xf32>
    %c0_6 = arith.constant 0 : index
    %c0_7 = arith.constant 0 : index
    %8 = vector.load %arg4[%c0_6, %c0_7] : memref<256x256xf32, #tpu.memory_space<vmem>>, vector<256x256xf32>
    %cst_8 = arith.constant dense<0.000000e+00> : vector<8x256xf32>
    %9 = tpu.matmul %7, %8, %cst_8 {dimension_numbers = #tpu.dot_dimension_numbers<[1], [0], [0], [1], [0, 0, 1, 1], [], []>} : vector<8x256xf32>, vector<256x256xf32>, vector<8x256xf32> -> vector<8x256xf32>
    %c0_9 = arith.constant 0 : index
    %c0_10 = arith.constant 0 : index
    %10 = vector.load %arg5[%c0_9, %c0_10] : memref<1x256xf32, #tpu.memory_space<vmem>>, vector<1x256xf32>
    %11 = vector.broadcast %10 : vector<1x256xf32> to vector<8x256xf32>
    %12 = arith.addf %9, %11 : vector<8x256xf32>
    %cst_11 = arith.constant 0.000000e+00 : f32
    %13 = vector.broadcast %cst_11 : f32 to vector<8x256xf32>
    %14 = arith.maximumf %12, %13 : vector<8x256xf32>
    %c0_12 = arith.constant 0 : index
    %c0_13 = arith.constant 0 : index
    %15 = vector.load %arg6[%c0_12, %c0_13] : memref<256x8xf32, #tpu.memory_space<vmem>>, vector<256x8xf32>
    %cst_14 = arith.constant dense<0.000000e+00> : vector<8x8xf32>
    %16 = tpu.matmul %14, %15, %cst_14 {dimension_numbers = #tpu.dot_dimension_numbers<[1], [0], [0], [1], [0, 0, 1, 1], [], []>} : vector<8x256xf32>, vector<256x8xf32>, vector<8x8xf32> -> vector<8x8xf32>
    %c0_15 = arith.constant 0 : index
    %c0_16 = arith.constant 0 : index
    %17 = vector.load %arg7[%c0_15, %c0_16] : memref<1x8xf32, #tpu.memory_space<vmem>>, vector<1x8xf32>
    %18 = vector.broadcast %17 : vector<1x8xf32> to vector<8x8xf32>
    %19 = arith.addf %16, %18 : vector<8x8xf32>
    %c0_17 = arith.constant 0 : index
    %c0_18 = arith.constant 0 : index
    %20 = vector.load %arg8[%c0_17, %c0_18] : memref<8x8xf32, #tpu.memory_space<vmem>>, vector<8x8xf32>
    tpu.vector_store %arg8[%c0_17, %c0_18], %19 {strides = array<i32>} : memref<8x8xf32, #tpu.memory_space<vmem>>, vector<8x8xf32>,
    return
  }
  func.func @transform_0(%arg0: i32) -> (i32, i32) {
    %c0_i32 = arith.constant 0 : i32
    %c0_i32_0 = arith.constant 0 : i32
    return %arg0, %c0_i32 : i32, i32
  }
  func.func @transform_1(%arg0: i32) -> (i32, i32) {
    %c0_i32 = arith.constant 0 : i32
    %c0_i32_0 = arith.constant 0 : i32
    %c0_i32_1 = arith.constant 0 : i32
    return %c0_i32, %c0_i32_0 : i32, i32
  }
  func.func @transform_2(%arg0: i32) -> (i32, i32) {
    %c0_i32 = arith.constant 0 : i32
    %c0_i32_0 = arith.constant 0 : i32
    %c0_i32_1 = arith.constant 0 : i32
    return %c0_i32, %c0_i32_0 : i32, i32
  }
  func.func @transform_3(%arg0: i32) -> (i32, i32) {
    %c0_i32 = arith.constant 0 : i32
    %c0_i32_0 = arith.constant 0 : i32
    %c0_i32_1 = arith.constant 0 : i32
    return %c0_i32, %c0_i32_0 : i32, i32
  }
  func.func @transform_4(%arg0: i32) -> (i32, i32) {
    %c0_i32 = arith.constant 0 : i32
    %c0_i32_0 = arith.constant 0 : i32
    %c0_i32_1 = arith.constant 0 : i32
    return %c0_i32, %c0_i32_0 : i32, i32
  }
  func.func @transform_5(%arg0: i32) -> (i32, i32) {
    %c0_i32 = arith.constant 0 : i32
    %c0_i32_0 = arith.constant 0 : i32
    %c0_i32_1 = arith.constant 0 : i32
    return %c0_i32, %c0_i32_0 : i32, i32
  }
  func.func @transform_6(%arg0: i32) -> (i32, i32) {
    %c0_i32 = arith.constant 0 : i32
    %c0_i32_0 = arith.constant 0 : i32
    %c0_i32_1 = arith.constant 0 : i32
    return %c0_i32, %c0_i32_0 : i32, i32
  }
  func.func @transform_7(%arg0: i32) -> (i32, i32) {
    %c0_i32 = arith.constant 0 : i32
    %c0_i32_0 = arith.constant 0 : i32
    return %arg0, %c0_i32 : i32, i32
  }
}

</mosaic_0001>

<bundles_post_ra>
// kernel: tpu_custom_call.1
= control target key start
LH: loop header
LB: loop body
LE: loop exit
PB: predicated region body
PF: predicated region fallthrough
CT: control target
= control target key end

     0   :  { %12 = vsyncpa [#allocation3], 0  ;;  %s683_s0 = inlined_call_operand.vmem [shape: f32[8,32], index: 0, kind: input, shape index: {}]   ;;  %s684_s1 = inlined_call_operand.vmem [shape: f32[32,256], index: 1, kind: input, shape index: {}]   ;;  %s685_s2 = inlined_call_operand.vmem [shape: f32[1,256], index: 2, kind: input, shape index: {}]   ;;  %s686_s3 = inlined_call_operand.hbm [shape: f32[256,256], index: 3, kind: input, shape index: {}]   ;;  %s687_s4 = inlined_call_operand.vmem [shape: f32[1,256], index: 4, kind: input, shape index: {}]   ;;  %s688_s5 = inlined_call_operand.vmem [shape: f32[256,8], index: 5, kind: input, shape index: {}]   ;;  %s689_s6 = inlined_call_operand.vmem [shape: f32[1,8], index: 6, kind: input, shape index: {}]   ;;  %s690_s7 = inlined_call_operand.hbm [shape: f32[8,8], index: 7, kind: output, shape index: {}]  }
   0x1   :  { %13 = vsyncpa [#allocation4], 0  ;;  %s500_s24 = smov [#allocation2]  }
   0x2   :  { %s25_s25 = sshll.u32 %s500_s24, 4  ;;  %s26_s25 = int_to_ptr.vmem [resolvable:$true] %s25_s25 }
   0x3   :  { %s464_s26 = scalar_lea.vmem %s26_s25, 8192  ;;  %p469_p1 = scmp.lt.s32.totalorder %s26_s25, %s26_s25 }
   0x4   :  { %p465_p0 = scmp.ne.s32.totalorder %s26_s25, %s464_s26  ;;  %p470_p2 = scmp.lt.s32.totalorder %s464_s26, %s464_s26 }
   0x6   :  { %p471_p3 = por %p470_p2, %p469_p1 }
   0x8   :  { %p472_p4 = pnand %p471_p3, %p465_p0 }
   0xa   :  { %475 = shalt.err (!%p472_p4)
}
   0xb   :  { %s501_s27 = smov 256   ;;  %s502_s28 = smov 16  }
   0xc   :  { %31 = dma.hbm_to_vmem [thread:$0]  %s686_s3, 8192, %s26_s25, [#allocation3], %s501_s27, %s501_s27, %s502_s28  }
   0xd   :  { %496 = dma.done.wait [#allocation3], 8192  }
   0xe   :  { %497 = vsyncadd [#allocation3], 4294959104  ;;  %v503_v0 = vmov 0.0   ;;  %v49_v1 = vld [vmem:[%s684_s1 + $0x38] sm:$0xff]  ;;  %v48_v2 = vld [vmem:[%s684_s1 + $0x30] sm:$0xff]  ;;  %vm62_vm0 = vcmask 261120  }
   0xf   :  { %130 = vmatprep.mubr.f32.mxu0 %v503_v0  ;;  %v47_v3 = vld [vmem:[%s684_s1 + $0x28] sm:$0xff]  ;;  %90 = vmatprep.subr.mxu0 %v49_v1  ;;  %v46_v4 = vld [vmem:[%s684_s1 + $0x20] sm:$0xff]  ;;  %v45_v5 = vld [vmem:[%s684_s1 + $0x18] sm:$0xff]  ;;  %vm397_vm1 = vcmask 64512  }
  0x10   :  { %91 = vmatpush1.msra.mxu0 %v48_v2  ;;  %v44_v6 = vld [vmem:[%s684_s1 + $0x10] sm:$0xff]  ;;  %v170_v7 = vld [vmem:[#allocation2 + $0xf8] sm:$0xff]  ;;  %v168_v9 = vld [vmem:[#allocation2 + $0xe8] sm:$0xff] }
  0x11   :  { %92 = vmatprep.subr.mxu0 %v47_v3  ;;  %v169_v8 = vld [vmem:[#allocation2 + $0xf0] sm:$0xff]  ;;  %v43_v10 = vld [vmem:[%s684_s1 + $0x8] sm:$0xff]  ;;  %215 = vmatprep.subr.mxu1 %v170_v7  ;;  %v167_v11 = vld [vmem:[#allocation2 + $0xe0] sm:$0xff] }
  0x12   :  { %93 = vmatpush1.msra.mxu0 %v46_v4  ;;  %v42_v12 = vld [vmem:[%s684_s1] sm:$0xff]  ;;  %216 = vmatpush1.msra.mxu1 %v169_v8  ;;  %v166_v13 = vld [vmem:[#allocation2 + $0xd8] sm:$0xff]  ;;  %v165_v15 = vld [vmem:[#allocation2 + $0xd0] sm:$0xff] }
  0x13   :  { %94 = vmatprep.subr.mxu0 %v45_v5  ;;  %v41_v14 = vld [vmem:[%s683_s0] sm:$0xff]  ;;  %217 = vmatprep.subr.mxu1 %v168_v9  ;;  %v164_v16 = vld [vmem:[#allocation2 + $0xc8] sm:$0xff]  ;;  %v162_v18 = vld [vmem:[#allocation2 + $0xb8] sm:$0xff] }
  0x14   :  { %95 = vmatpush1.msra.mxu0 %v44_v6  ;;  %218 = vmatpush1.msra.mxu1 %v167_v11  ;;  %v163_v17 = vld [vmem:[#allocation2 + $0xc0] sm:$0xff]  ;;  %v161_v19 = vld [vmem:[#allocation2 + $0xb0] sm:$0xff]  ;;  %v160_v20 = vld [vmem:[#allocation2 + $0xa8] sm:$0xff] }
  0x15   :  { %96 = vmatprep.subr.mxu0 %v43_v10  ;;  %219 = vmatprep.subr.mxu1 %v166_v13  ;;  %v159_v21 = vld [vmem:[#allocation2 + $0xa0] sm:$0xff]  ;;  %v158_v22 = vld [vmem:[#allocation2 + $0x98] sm:$0xff]  ;;  %v157_v23 = vld [vmem:[#allocation2 + $0x90] sm:$0xff] }
  0x16   :  { %97 = vmatpush1.msra.mxu0 %v42_v12  ;;  %220 = vmatpush1.msra.mxu1 %v165_v15  ;;  %v156_v24 = vld [vmem:[#allocation2 + $0x88] sm:$0xff]  ;;  %v155_v25 = vld [vmem:[#allocation2 + $0x80] sm:$0xff]  ;;  %v154_v26 = vld [vmem:[#allocation2 + $0x78] sm:$0xff] }
  0x17   :  { %414 = vmatmul.mubr.msk.f32.vlgmr.msra.gmra.mxu0 %vm62_vm0, %v41_v14  ;;  %221 = vmatprep.subr.mxu1 %v164_v16  ;;  %v153_v27 = vld [vmem:[#allocation2 + $0x70] sm:$0xff]  ;;  %v152_v28 = vld [vmem:[#allocation2 + $0x68] sm:$0xff]  ;;  %v151_v29 = vld [vmem:[#allocation2 + $0x60] sm:$0xff] }
  0x18   :  { %222 = vmatpush1.msra.mxu1 %v163_v17  ;;  %v150_v30 = vld [vmem:[#allocation2 + $0x58] sm:$0xff]  ;;  %v149_v31 = vld [vmem:[#allocation2 + $0x50] sm:$0xff]  ;;  %v148_v32 = vld [vmem:[#allocation2 + $0x48] sm:$0xff] }
  0x19   :  { %223 = vmatprep.subr.mxu1 %v162_v18  ;;  %v147_v33 = vld [vmem:[#allocation2 + $0x40] sm:$0xff]  ;;  %v146_v34 = vld [vmem:[#allocation2 + $0x38] sm:$0xff]  ;;  %v145_v35 = vld [vmem:[#allocation2 + $0x30] sm:$0xff] }
  0x1a   :  { %224 = vmatpush1.msra.mxu1 %v161_v19  ;;  %v144_v36 = vld [vmem:[#allocation2 + $0x28] sm:$0xff]  ;;  %v143_v37 = vld [vmem:[#allocation2 + $0x20] sm:$0xff]  ;;  %v142_v38 = vld [vmem:[#allocation2 + $0x18] sm:$0xff] }
  0x1b   :  { %225 = vmatprep.subr.mxu1 %v160_v20  ;;  %v141_v39 = vld [vmem:[#allocation2 + $0x10] sm:$0xff]  ;;  %v140_v40 = vld [vmem:[#allocation2 + $0x8] sm:$0xff]  ;;  %v139_v41 = vld [vmem:[#allocation2] sm:$0xff] }
  0x1c   :  { %226 = vmatpush1.msra.mxu1 %v159_v21  ;;  %v202_v42 = vld [vmem:[#allocation2 + $0x1f8] sm:$0xff]  ;;  %v201_v43 = vld [vmem:[#allocation2 + $0x1f0] sm:$0xff]  ;;  %v200_v44 = vld [vmem:[#allocation2 + $0x1e8] sm:$0xff] }
  0x1d   :  { %227 = vmatprep.subr.mxu1 %v158_v22  ;;  %v199_v45 = vld [vmem:[#allocation2 + $0x1e0] sm:$0xff]  ;;  %v198_v46 = vld [vmem:[#allocation2 + $0x1d8] sm:$0xff]  ;;  %v197_v47 = vld [vmem:[#allocation2 + $0x1d0] sm:$0xff] }
  0x1e   :  { %228 = vmatpush1.msra.mxu1 %v157_v23  ;;  %v196_v48 = vld [vmem:[#allocation2 + $0x1c8] sm:$0xff]  ;;  %v195_v49 = vld [vmem:[#allocation2 + $0x1c0] sm:$0xff]  ;;  %v194_v50 = vld [vmem:[#allocation2 + $0x1b8] sm:$0xff] }
  0x1f   :  { %229 = vmatprep.subr.mxu1 %v156_v24  ;;  %v193_v51 = vld [vmem:[#allocation2 + $0x1b0] sm:$0xff]  ;;  %v192_v52 = vld [vmem:[#allocation2 + $0x1a8] sm:$0xff]  ;;  %v191_v53 = vld [vmem:[#allocation2 + $0x1a0] sm:$0xff] }
  0x20   :  { %230 = vmatpush1.msra.mxu1 %v155_v25  ;;  %v190_v54 = vld [vmem:[#allocation2 + $0x198] sm:$0xff]  ;;  %v189_v55 = vld [vmem:[#allocation2 + $0x190] sm:$0xff]  ;;  %v188_v56 = vld [vmem:[#allocation2 + $0x188] sm:$0xff] }
  0x21   :  { %231 = vmatprep.subr.mxu1 %v154_v26  ;;  %v187_v57 = vld [vmem:[#allocation2 + $0x180] sm:$0xff]  ;;  %v186_v58 = vld [vmem:[#allocation2 + $0x178] sm:$0xff]  ;;  %v185_v59 = vld [vmem:[#allocation2 + $0x170] sm:$0xff] }
  0x22   :  { %232 = vmatpush1.msra.mxu1 %v153_v27  ;;  %v184_v60 = vld [vmem:[#allocation2 + $0x168] sm:$0xff]  ;;  %v183_v61 = vld [vmem:[#allocation2 + $0x160] sm:$0xff]  ;;  %v182_v62 = vld [vmem:[#allocation2 + $0x158] sm:$0xff] }
  0x23   :  { %233 = vmatprep.subr.mxu1 %v152_v28  ;;  %v181_v63 = vld [vmem:[#allocation2 + $0x150] sm:$0xff]  ;;  %v180_v0 = vld [vmem:[#allocation2 + $0x148] sm:$0xff]  ;;  %v179_v1 = vld [vmem:[#allocation2 + $0x140] sm:$0xff] }
  0x24   :  { %234 = vmatpush1.msra.mxu1 %v151_v29  ;;  %v178_v2 = vld [vmem:[#allocation2 + $0x138] sm:$0xff]  ;;  %v177_v3 = vld [vmem:[#allocation2 + $0x130] sm:$0xff]  ;;  %v176_v4 = vld [vmem:[#allocation2 + $0x128] sm:$0xff] }
  0x25   :  { %235 = vmatprep.subr.mxu1 %v150_v30  ;;  %v175_v5 = vld [vmem:[#allocation2 + $0x120] sm:$0xff]  ;;  %v174_v6 = vld [vmem:[#allocation2 + $0x118] sm:$0xff]  ;;  %v173_v7 = vld [vmem:[#allocation2 + $0x110] sm:$0xff] }
  0x26   :  { %236 = vmatpush1.msra.mxu1 %v149_v31  ;;  %v172_v8 = vld [vmem:[#allocation2 + $0x108] sm:$0xff]  ;;  %v171_v9 = vld [vmem:[#allocation2 + $0x100] sm:$0xff]  ;;  %v319_v10 = vld [vmem:[%s688_s5 + $0xf8] sm:$0xff] }
  0x27   :  { %237 = vmatprep.subr.mxu1 %v148_v32  ;;  %v303_v11 = vld [vmem:[%s688_s5 + $0x78] sm:$0xff]  ;;  %v318_v12 = vld [vmem:[%s688_s5 + $0xf0] sm:$0xff]  ;;  %416 = vmatprep.subr.mxu0 %v319_v10  ;;  %v317_v14 = vld [vmem:[%s688_s5 + $0xe8] sm:$0xff] }
  0x28   :  { %238 = vmatpush1.msra.mxu1 %v147_v33  ;;  %v302_v13 = vld [vmem:[%s688_s5 + $0x70] sm:$0xff]  ;;  %417 = vmatpush3.msra.mxu0 %v303_v11  ;;  %v301_v15 = vld [vmem:[%s688_s5 + $0x68] sm:$0xff]  ;;  %v316_v16 = vld [vmem:[%s688_s5 + $0xe0] sm:$0xff] }
  0x29   :  { %239 = vmatprep.subr.mxu1 %v146_v34  ;;  %418 = vmatprep.subr.mxu0 %v318_v12  ;;  %v300_v17 = vld [vmem:[%s688_s5 + $0x60] sm:$0xff]  ;;  %v315_v18 = vld [vmem:[%s688_s5 + $0xd8] sm:$0xff]  ;;  %v314_v20 = vld [vmem:[%s688_s5 + $0xd0] sm:$0xff]  ;;  %v52_v34 = vlaneseq }
  0x2a   :  { %240 = vmatpush1.msra.mxu1 %v145_v35  ;;  %419 = vmatpush3.msra.mxu0 %v302_v13  ;;  %v299_v19 = vld [vmem:[%s688_s5 + $0x58] sm:$0xff]  ;;  %v298_v21 = vld [vmem:[%s688_s5 + $0x50] sm:$0xff]  ;;  %v313_v22 = vld [vmem:[%s688_s5 + $0xc8] sm:$0xff] }
  0x2b   :  { %241 = vmatprep.subr.mxu1 %v144_v36  ;;  %420 = vmatprep.subr.mxu0 %v317_v14  ;;  %v297_v23 = vld [vmem:[%s688_s5 + $0x48] sm:$0xff]  ;;  %v312_v24 = vld [vmem:[%s688_s5 + $0xc0] sm:$0xff]  ;;  %v311_v26 = vld [vmem:[%s688_s5 + $0xb8] sm:$0xff]  ;;  %v53_v35 = vshrl.u32 %v52_v34, 7 }
  0x2c   :  { %242 = vmatpush1.msra.mxu1 %v143_v37  ;;  %421 = vmatpush3.msra.mxu0 %v301_v15  ;;  %v296_v25 = vld [vmem:[%s688_s5 + $0x40] sm:$0xff]  ;;  %v295_v27 = vld [vmem:[%s688_s5 + $0x38] sm:$0xff]  ;;  %v310_v28 = vld [vmem:[%s688_s5 + $0xb0] sm:$0xff] }
  0x2d   :  { %243 = vmatprep.subr.mxu1 %v142_v38  ;;  %422 = vmatprep.subr.mxu0 %v316_v16  ;;  %v294_v29 = vld [vmem:[%s688_s5 + $0x30] sm:$0xff]  ;;  %v309_v30 = vld [vmem:[%s688_s5 + $0xa8] sm:$0xff]  ;;  %v308_v32 = vld [vmem:[%s688_s5 + $0xa0] sm:$0xff]  ;;  %v54_v36 = vsub.s32 0, %v53_v35  ;;  %v58_v38 = vsub.s32 1, %v53_v35 }
  0x2e   :  { %244 = vmatpush1.msra.mxu1 %v141_v39  ;;  %423 = vmatpush3.msra.mxu0 %v300_v17  ;;  %v293_v31 = vld [vmem:[%s688_s5 + $0x28] sm:$0xff]  ;;  %v292_v33 = vld [vmem:[%s688_s5 + $0x20] sm:$0xff] }
  0x2f   :  { %245 = vmatprep.subr.mxu1 %v140_v40  ;;  %424 = vmatprep.subr.mxu0 %v315_v18  ;;  %v50_v37 = vld [vmem:[%s685_s2] sm:$0x3] }
  0x30   :  { %246 = vmatpush1.msra.mxu1 %v139_v41  ;;  %425 = vmatpush3.msra.mxu0 %v299_v19  ;;  %v55_v39 = vrot.slane %v50_v37, %v54_v36  ;;  %v59_v40 = vrot.slane %v50_v37, %v58_v38 }
  0x31   :  { %247 = vmatprep.subr.mxu1 %v202_v42  ;;  %426 = vmatprep.subr.mxu0 %v314_v20 }
  0x32   :  { %248 = vmatpush2.msra.mxu1 %v201_v43  ;;  %427 = vmatpush3.msra.mxu0 %v298_v21 }
  0x33   :  { %249 = vmatprep.subr.mxu1 %v200_v44  ;;  %428 = vmatprep.subr.mxu0 %v313_v22 }
  0x34   :  { %250 = vmatpush2.msra.mxu1 %v199_v45  ;;  %429 = vmatpush3.msra.mxu0 %v297_v23 }
  0x35   :  { %251 = vmatprep.subr.mxu1 %v198_v46  ;;  %430 = vmatprep.subr.mxu0 %v312_v24 }
  0x36   :  { %252 = vmatpush2.msra.mxu1 %v197_v47  ;;  %431 = vmatpush3.msra.mxu0 %v296_v25  ;;  %v307_v47 = vld [vmem:[%s688_s5 + $0x98] sm:$0xff] }
  0x37   :  { %253 = vmatprep.subr.mxu1 %v196_v48  ;;  %432 = vmatprep.subr.mxu0 %v311_v26  ;;  %v291_v48 = vld [vmem:[%s688_s5 + $0x18] sm:$0xff] }
  0x38   :  { %254 = vmatpush2.msra.mxu1 %v195_v49  ;;  %433 = vmatpush3.msra.mxu0 %v295_v27  ;;  %v306_v49 = vld [vmem:[%s688_s5 + $0x90] sm:$0xff] }
  0x39   :  { %255 = vmatprep.subr.mxu1 %v194_v50  ;;  %434 = vmatprep.subr.mxu0 %v310_v28  ;;  %v290_v50 = vld [vmem:[%s688_s5 + $0x10] sm:$0xff] }
  0x3a   :  { %256 = vmatpush2.msra.mxu1 %v193_v51  ;;  %435 = vmatpush3.msra.mxu0 %v294_v29  ;;  %v305_v51 = vld [vmem:[%s688_s5 + $0x88] sm:$0xff] }
  0x3b   :  { %257 = vmatprep.subr.mxu1 %v192_v52  ;;  %436 = vmatprep.subr.mxu0 %v309_v30  ;;  %v289_v52 = vld [vmem:[%s688_s5 + $0x8] sm:$0xff] }
  0x3c   :  { %258 = vmatpush2.msra.mxu1 %v191_v53  ;;  %437 = vmatpush3.msra.mxu0 %v293_v31  ;;  %v304_v53 = vld [vmem:[%s688_s5 + $0x80] sm:$0xff] }
  0x3d   :  { %259 = vmatprep.subr.mxu1 %v190_v54  ;;  %438 = vmatprep.subr.mxu0 %v308_v32  ;;  %v288_v54 = vld [vmem:[%s688_s5] sm:$0xff]  ;;  %s504_s5 = smov [#allocation5]  }
  0x3e   :  { %260 = vmatpush2.msra.mxu1 %v189_v55  ;;  %439 = vmatpush3.msra.mxu0 %v292_v33  ;;  %v203_v55 = vld [vmem:[%s687_s4] sm:$0x3]  ;;  %s405_s16 = sshll.u32 %s504_s5, 4  ;;  %s406_s16 = int_to_ptr.vmem [resolvable:$true] %s405_s16 }
  0x3f   :  { %261 = vmatprep.subr.mxu1 %v188_v56  ;;  %440 = vmatprep.subr.mxu0 %v307_v47  ;;  %v208_v56 = vrot.slane %v203_v55, %v54_v36  ;;  %s476_s4 = scalar_lea.vmem %s406_s16, 128  ;;  %p481_p6 = scmp.lt.s32.totalorder %s406_s16, %s406_s16 }
  0x40   :  { %262 = vmatpush2.msra.mxu1 %v187_v57  ;;  %441 = vmatpush3.msra.mxu0 %v291_v48  ;;  %v212_v57 = vrot.slane %v203_v55, %v58_v38  ;;  %p477_p5 = scmp.ne.s32.totalorder %s406_s16, %s476_s4  ;;  %p482_p7 = scmp.lt.s32.totalorder %s476_s4, %s476_s4 }
  0x41   :  { %263 = vmatprep.subr.mxu1 %v186_v58  ;;  %442 = vmatprep.subr.mxu0 %v306_v49 }
  0x42   :  { %264 = vmatpush2.msra.mxu1 %v185_v59  ;;  %443 = vmatpush3.msra.mxu0 %v290_v50  ;;  %p483_p8 = por %p482_p7, %p481_p6 }
  0x43   :  { %265 = vmatprep.subr.mxu1 %v184_v60  ;;  %444 = vmatprep.subr.mxu0 %v305_v51 }
  0x44   :  { %266 = vmatpush2.msra.mxu1 %v183_v61  ;;  %445 = vmatpush3.msra.mxu0 %v289_v52  ;;  %p484_p9 = pnand %p483_p8, %p477_p5 }
  0x45   :  { %267 = vmatprep.subr.mxu1 %v182_v62  ;;  %446 = vmatprep.subr.mxu0 %v304_v53 }
  0x46   :  { %268 = vmatpush2.msra.mxu1 %v181_v63  ;;  %447 = vmatpush3.msra.mxu0 %v288_v54 }
  0x47   :  { %269 = vmatprep.subr.mxu1 %v180_v0 }
  0x48   :  { %270 = vmatpush2.msra.mxu1 %v179_v1  ;;  %v415_v1 = vld [vmem:[%s689_s6] ss:$0 sm:$0xff] }
  0x49   :  { %271 = vmatprep.subr.mxu1 %v178_v2 }
  0x4a   :  { %272 = vmatpush2.msra.mxu1 %v177_v3 }
  0x4b   :  { %273 = vmatprep.subr.mxu1 %v176_v4 }
  0x4c   :  { %274 = vmatpush2.msra.mxu1 %v175_v5 }
  0x4d   :  { %275 = vmatprep.subr.mxu1 %v174_v6 }
  0x4e   :  { %276 = vmatpush2.msra.mxu1 %v173_v7 }
  0x4f   :  { %277 = vmatprep.subr.mxu1 %v172_v8 }
  0x50   :  { %278 = vmatpush2.msra.mxu1 %v171_v9 }
  0xd7   :  { %v132_v41 = vpop.f32.mrf.mxu0 }
  0xd8   :  { %v133_v42 = vadd.f32 %v132_v41, %v55_v39 }
  0xd9   :  { %v134_v43 = vpop.f32.mrf.mxu0 }
  0xda   :  { %v135_v44 = vadd.f32 %v134_v43, %v59_v40  ;;  %v137_v46 = vmax.f32 %v133_v42, 0.0 }
  0xdc   :  { %v138_v45 = vmax.f32 %v135_v44, 0.0 }
  0xde   :  { %279 = vmatprep.mubr.f32.mxu1 %v138_v45 }
  0xdf   :  { %280 = vmatmul.mubr.f32.vlgmr.msra.gmra.mxu1 %v137_v46 }
 0x19f   :  { %v281_v58 = vpop.f32.mrf.mxu1 }
 0x1a0   :  { %v282_v59 = vadd.f32 %v281_v58, %v208_v56 }
 0x1a1   :  { %v283_v60 = vpop.f32.mrf.mxu1 }
 0x1a2   :  { %v284_v61 = vadd.f32 %v283_v60, %v212_v57  ;;  %v286_v63 = vmax.f32 %v282_v59, 0.0 }
 0x1a4   :  { %v287_v62 = vmax.f32 %v284_v61, 0.0 }
 0x1a6   :  { %391 = vmatprep.mubr.f32.mxu0 %v287_v62 }
 0x1a7   :  { %392 = vmatmul.mubr.f32.vlgmr.msra.gmra.mxu0 %v286_v63 }
 0x267   :  { %v448_v0 = vpop.f32.mrf.mxu0 }
 0x269   :  { %v449_v2 = vpop.f32.mrf.mxu0 }
 0x26a   :  { %v450_v3 = vadd.f32 %v449_v2, %v448_v0 }
 0x26c   :  { %v394_v4 = vadd.f32 %v450_v3, %v415_v1 }
 0x26e   :  { %398 = vst.msk [vmem:[#allocation5] sm:$0xff] %vm397_vm1, %v394_v4 }
 0x26f   :  { %487 = shalt.err (!%p484_p9)
}
 0x270   :  { %408 = dma.vmem_to_hbm [thread:$0]  %s406_s16, 128, %s690_s7, [#allocation4]  }
 0x271   :  { %498 = dma.done.wait [#allocation4], 128  }
 0x272   :  { %499 = vsyncadd [#allocation4], 4294967168 }
 0x273   :  { %412 = vsyncpa [#allocation3], 1 }
 0x274   :  { %413 = vsyncpa [#allocation4], 1 }

</bundles_post_ra>
